<compile_context>
chip_gen: v6e
topology: v6e:2x2x1
jax: 0.10.0
libtpu: 0.0.40
codegen_flags: <defaults>
</compile_context>

<pallas_src>
import jax
import jax.numpy as jnp
from jax.experimental import pallas as pl
from jax.experimental.pallas import tpu as pltpu

_LANE = 128
_TARGET_BLOCK_BYTES = 2 * 1024 * 1024  # ~2 MiB per block buffer


# ----------------------------------------------------------------------------
# Fast path: aliased no-op (near-zero HBM traffic).
# ----------------------------------------------------------------------------
def _alias_noop_kernel(x_ref, o_ref):
    # Output aliases the input buffer; nothing to move.  `touch` just pins the
    # dependency so the aliased output counts as produced by this kernel.
    del x_ref
    pltpu.touch(o_ref)


def _alias_identity(x: jax.Array) -> jax.Array:
    return pl.pallas_call(
        _alias_noop_kernel,
        out_shape=jax.ShapeDtypeStruct(x.shape, x.dtype),
        in_specs=[pl.BlockSpec(memory_space=pl.ANY)],
        out_specs=pl.BlockSpec(memory_space=pl.ANY),
        input_output_aliases={0: 0},
        cost_estimate=pl.CostEstimate(flops=0, transcendentals=0, bytes_accessed=0),
    )(x)


# ----------------------------------------------------------------------------
# Fallback path: lane-dense tiled copy.
# ----------------------------------------------------------------------------
def _copy_kernel(x_ref, o_ref):
    o_ref[...] = x_ref[...]


def _sublane_pack(itemsize: int) -> int:
    # Native sublane packing per dtype width (f32:8, bf16:16, int8/fp8:32).
    return {1: 32, 2: 16, 4: 8}.get(itemsize, 8)


def _to_2d(x: jax.Array) -> jax.Array:
    """Reshape to a lane-dense 2D view when possible (contiguous reshape is free)."""
    n = x.size
    if n % _LANE == 0:
        for c in (4096, 2048, 1024, 512, 256, 128):
            if n % c == 0:
                return x.reshape(n // c, c)
    # Remainder / irregular sizes: keep last dim as lanes.
    if x.ndim >= 2:
        return x.reshape(-1, x.shape[-1])
    return x.reshape(1, n)


def _copy_identity(x: jax.Array) -> jax.Array:
    orig_shape = x.shape
    x2d = _to_2d(x)
    rows, cols = x2d.shape
    itemsize = jnp.dtype(x.dtype).itemsize
    pack = _sublane_pack(itemsize)

    # Column tile: full width unless even a minimal-height block would blow the
    # per-buffer budget (only tile-able when cols is a multiple of 128).
    if cols % _LANE == 0 and cols * itemsize * pack > _TARGET_BLOCK_BYTES:
        tc = max(_LANE, (_TARGET_BLOCK_BYTES // (pack * itemsize)) // _LANE * _LANE)
    else:
        tc = cols

    # Row tile: ~2 MiB blocks, rounded to the sublane packing (or full dim).
    tr_cand = max(1, _TARGET_BLOCK_BYTES // (tc * itemsize))
    if tr_cand >= rows or rows <= pack:
        tr = rows
    else:
        tr = max(pack, (tr_cand // pack) * pack)

    grid = (pl.cdiv(rows, tr), pl.cdiv(cols, tc))

    out2d = pl.pallas_call(
        _copy_kernel,
        out_shape=jax.ShapeDtypeStruct((rows, cols), x.dtype),
        grid_spec=pltpu.PrefetchScalarGridSpec(
            num_scalar_prefetch=0,
            grid=grid,
            in_specs=[pl.BlockSpec((tr, tc), lambda i, j: (i, j))],
            out_specs=pl.BlockSpec((tr, tc), lambda i, j: (i, j)),
        ),
        compiler_params=pltpu.CompilerParams(
            dimension_semantics=("parallel", "parallel"),
        ),
        cost_estimate=pl.CostEstimate(
            flops=0, transcendentals=0, bytes_accessed=2 * x.size * itemsize,
        ),
    )(x2d)
    return out2d.reshape(orig_shape)


# ----------------------------------------------------------------------------
# Public entry point.
# ----------------------------------------------------------------------------
_ALIAS_SUPPORTED = None  # probed once at first call


def identity(x: jax.Array) -> jax.Array:
    """Returns `x` unchanged (same shape, same dtype), computed via Pallas."""
    global _ALIAS_SUPPORTED

    # 0-d / empty tensors: a kernel launch is pure overhead.
    if x.ndim == 0 or x.size == 0:
        return x

    if _ALIAS_SUPPORTED is None:
        try:
            probe = jnp.zeros((8, _LANE), jnp.float32)
            jax.block_until_ready(_alias_identity(probe))
            _ALIAS_SUPPORTED = True
        except Exception:
            _ALIAS_SUPPORTED = False

    if _ALIAS_SUPPORTED:
        return _alias_identity(x)
    return _copy_identity(x)


if __name__ == "__main__":
    key = jax.random.PRNGKey(0)

    # Primary example: tensor of any shape.
    x = jax.random.normal(key, (2, 4, 16, 16), dtype=jnp.float32)
    out = identity(x)
    jax.block_until_ready(out)
    assert out.shape == x.shape, f"shape mismatch: {out.shape} vs {x.shape}"
    assert out.dtype == x.dtype, f"dtype mismatch: {out.dtype} vs {x.dtype}"
    assert bool(jnp.all(out == x)), "identity output differs from input"

    # Also exercise the lane-dense tiled-copy path on assorted shapes/dtypes.
    for i, (shape, dtype) in enumerate(
        [((1000,), jnp.float32),        # 1D, not a multiple of 128
         ((2, 5), jnp.float32),         # tiny ragged 2D
         ((3, 7, 11), jnp.bfloat16),    # odd 3D
         ((4, 6, 64), jnp.bfloat16)]):  # multiple of 128 -> lane-dense rechunk
        xi = jax.random.normal(jax.random.PRNGKey(i + 1), shape, dtype=dtype)
        oi = _copy_identity(xi)
        jax.block_until_ready(oi)
        assert oi.shape == xi.shape and oi.dtype == xi.dtype
        assert bool(jnp.all(oi == xi)), f"copy path mismatch for {shape}"

    # 0-d path.
    s = jnp.float32(3.5)
    assert bool(identity(s) == s)

    print("KERNEL_OK")
</pallas_src>

<mosaic_0001>
module attributes {stable_mosaic.version = 11 : i64} {
  func.func @_alias_noop_kernel(%arg0: memref<8x128xf32, #tpu.memory_space<any>>, %arg1: memref<8x128xf32, #tpu.memory_space<any>>) attributes {dimension_semantics = [], scalar_prefetch = 0 : i64, scratch_operands = 0 : i64, tpu.core_type = #tpu.core_type<tc>} {
    return
  }
}

module attributes {stable_mosaic.version = 11 : i64} {
  func.func @_copy_kernel(%arg0: i32, %arg1: i32, %arg2: memref<1x2048xf32, #tpu.memory_space<vmem>>, %arg3: memref<1x2048xf32, #tpu.memory_space<vmem>>) attributes {dimension_semantics = [#tpu.dimension_semantics<parallel>, #tpu.dimension_semantics<parallel>], iteration_bounds = array<i64: 1, 1>, scalar_prefetch = 0 : i64, scratch_operands = 0 : i64, tpu.core_type = #tpu.core_type<tc>, window_params = [{transform_indices = @transform_0, window_bounds = array<i64: 1, 2048>}, {transform_indices = @transform_1, window_bounds = array<i64: 1, 2048>}]} {
    %c0 = arith.constant 0 : index
    %c0_0 = arith.constant 0 : index
    %0 = vector.load %arg2[%c0, %c0_0] : memref<1x2048xf32, #tpu.memory_space<vmem>>, vector<1x2048xf32>
    %c0_1 = arith.constant 0 : index
    %c0_2 = arith.constant 0 : index
    %1 = vector.load %arg3[%c0_1, %c0_2] : memref<1x2048xf32, #tpu.memory_space<vmem>>, vector<1x2048xf32>
    tpu.vector_store %arg3[%c0_1, %c0_2], %0 {strides = array<i32>} : memref<1x2048xf32, #tpu.memory_space<vmem>>, vector<1x2048xf32>,
    return
  }
  func.func @transform_0(%arg0: i32, %arg1: i32) -> (i32, i32) {
    %c0_i32 = arith.constant 0 : i32
    return %arg0, %arg1 : i32, i32
  }
  func.func @transform_1(%arg0: i32, %arg1: i32) -> (i32, i32) {
    %c0_i32 = arith.constant 0 : i32
    return %arg0, %arg1 : i32, i32
  }
}

</mosaic_0001>

<bundles_post_ra>
// kernel: tpu_custom_call.1
= control target key start
LH: loop header
LB: loop body
LE: loop exit
PB: predicated region body
PF: predicated region fallthrough
CT: control target
= control target key end

     0   :  { %s16_s0 = inlined_call_operand.hbm [shape: f32[8,128], index: 0, kind: input, shape index: {}, may-alias: {0,1}]   ;;  %s17_s1 = inlined_call_operand.hbm [shape: f32[8,128], index: 1, kind: output, shape index: {}, may-alias: {0,1}]  }

// kernel: tpu_custom_call.1
= control target key start
LH: loop header
LB: loop body
LE: loop exit
PB: predicated region body
PF: predicated region fallthrough
CT: control target
= control target key end

     0   :  { %6 = vsyncpa [#allocation3], 0  ;;  %s104_s0 = inlined_call_operand.hbm [shape: f32[1,2048], index: 0, kind: input, shape index: {}]   ;;  %s105_s1 = inlined_call_operand.hbm [shape: f32[1,2048], index: 1, kind: output, shape index: {}]  }
   0x1   :  { %7 = vsyncpa [#allocation4], 0  ;;  %s86_s6 = smov [#allocation2]  }
   0x2   :  { %s14_s7 = sshll.u32 %s86_s6, 4  ;;  %s15_s7 = int_to_ptr.vmem [resolvable:$true] %s14_s7 }
   0x3   :  { %s50_s8 = scalar_lea.vmem %s15_s7, 256  ;;  %p55_p1 = scmp.lt.s32.totalorder %s15_s7, %s15_s7 }
   0x4   :  { %p51_p0 = scmp.ne.s32.totalorder %s15_s7, %s50_s8  ;;  %p56_p2 = scmp.lt.s32.totalorder %s50_s8, %s50_s8 }
   0x6   :  { %p57_p3 = por %p56_p2, %p55_p1 }
   0x8   :  { %p58_p4 = pnand %p57_p3, %p51_p0 }
   0xa   :  { %61 = shalt.err (!%p58_p4)
}
   0xb   :  { %17 = dma.hbm_to_vmem [thread:$0]  %s104_s0, 256, %s15_s7, [#allocation3]  }
   0xc   :  { %82 = dma.done.wait [#allocation3], 256  }
   0xd   :  { %83 = vsyncadd [#allocation3], 4294967040  ;;  %s87_s11 = smov [#allocation5]   ;;  %v21_v0 = vld [vmem:[#allocation2] sm:$0xff]  ;;  %v22_v1 = vld [vmem:[#allocation2 + $0x8] sm:$0xff] }
   0xe   :  { %s31_s12 = sshll.u32 %s87_s11, 4  ;;  %23 = vst [vmem:[#allocation5] sm:$0xff] %v21_v0  ;;  %24 = vst [vmem:[#allocation5 + $0x8] sm:$0xff] %v22_v1  ;;  %s32_s12 = int_to_ptr.vmem [resolvable:$true] %s31_s12 }
   0xf   :  { %s62_s13 = scalar_lea.vmem %s32_s12, 256  ;;  %p67_p6 = scmp.lt.s32.totalorder %s32_s12, %s32_s12 }
  0x10   :  { %p63_p5 = scmp.ne.s32.totalorder %s32_s12, %s62_s13  ;;  %p68_p7 = scmp.lt.s32.totalorder %s62_s13, %s62_s13 }
  0x12   :  { %p69_p8 = por %p68_p7, %p67_p6 }
  0x14   :  { %p70_p9 = pnand %p69_p8, %p63_p5 }
  0x16   :  { %73 = shalt.err (!%p70_p9)
}
  0x17   :  { %34 = dma.vmem_to_hbm [thread:$0]  %s32_s12, 256, %s105_s1, [#allocation4]  }
  0x18   :  { %84 = dma.done.wait [#allocation4], 256  }
  0x19   :  { %85 = vsyncadd [#allocation4], 4294967040 }
  0x1a   :  { %38 = vsyncpa [#allocation3], 1 }
  0x1b   :  { %39 = vsyncpa [#allocation4], 1 }

</bundles_post_ra>
